<compile_context>
chip_gen: v7x
topology: tpu7x:2x2x1
jax: 0.10.0
libtpu: 0.0.40
codegen_flags: <defaults>
</compile_context>

<pallas_src>
import jax
import jax.numpy as jnp
import numpy as np
from jax.experimental import pallas as pl
from jax.experimental.pallas import tpu as pltpu

LANE = 128


def _round_up(n, m=LANE):
    return ((n + m - 1) // m) * m


# ------------------------------------------------------------------ kernel ---
def encoder_fused_kernel(x_ref,
                         w1_ref, b1_ref, s1_ref, t1_ref,
                         w2_ref, b2_ref, s2_ref, t2_ref,
                         w3_ref, b3_ref,
                         out_ref):
    """Both branches fused: 3 matmuls + ReLU + folded-BN affine (eval mode)."""
    h = x_ref[...]

    # Layer 1: Linear -> ReLU -> BatchNorm(eval) -> Dropout(eval == identity)
    h = jnp.dot(h, w1_ref[...], preferred_element_type=jnp.float32) + b1_ref[...]
    h = jnp.maximum(h, 0.0)
    h = h * s1_ref[...] + t1_ref[...]

    # Layer 2 (block-diagonal: mu/logvar branches do not mix)
    h = jnp.dot(h, w2_ref[...], preferred_element_type=jnp.float32) + b2_ref[...]
    h = jnp.maximum(h, 0.0)
    h = h * s2_ref[...] + t2_ref[...]

    # Final projection (block-diagonal) to [.., 2*latent] padded to 128 lanes
    out_ref[...] = (jnp.dot(h, w3_ref[...], preferred_element_type=jnp.float32)
                    + b3_ref[...]).astype(out_ref.dtype)


# ----------------------------------------------------------------- wrapper ---
def _full_spec(shape):
    """Whole-array block, constant block index across the grid (VMEM-resident)."""
    return pl.BlockSpec(shape, lambda i: tuple(0 for _ in shape))


def fuse_branch_params(p_mu, p_lv, latent):
    """Fuse the two branches into one weight set, padded to 128-lane widths.

    Layer 1 weights are concatenated along out-features (shared input x);
    layers 2/3 are block-diagonal (branches stay independent). All out-feature
    dims are zero-padded to a multiple of 128 so every matmul/affine/store in
    the kernel runs on full, unmasked vregs.
    """
    D1 = p_mu["w1"].shape[1]
    D2 = p_mu["w2"].shape[1]
    N1 = _round_up(2 * D1)
    N2 = _round_up(2 * D2)
    N3 = _round_up(2 * latent)

    def pad_cols(a, n):
        return jnp.pad(a, ((0, 0), (0, n - a.shape[1])))

    def cat_pad(a_mu, a_lv, n):
        return pad_cols(jnp.concatenate([a_mu, a_lv], axis=1), n)

    def block_diag_pad(a_mu, a_lv, rows, cols):
        r_mu, c_mu = a_mu.shape
        r_lv, c_lv = a_lv.shape
        out = jnp.zeros((rows, cols), jnp.float32)
        out = out.at[:r_mu, :c_mu].set(a_mu)
        out = out.at[r_mu:r_mu + r_lv, c_mu:c_mu + c_lv].set(a_lv)
        return out

    return dict(
        w1=cat_pad(p_mu["w1"], p_lv["w1"], N1),
        b1=cat_pad(p_mu["b1"], p_lv["b1"], N1),
        s1=cat_pad(p_mu["s1"], p_lv["s1"], N1),   # pad value 0: padded cols stay 0
        t1=cat_pad(p_mu["t1"], p_lv["t1"], N1),
        w2=block_diag_pad(p_mu["w2"], p_lv["w2"], N1, N2),
        b2=cat_pad(p_mu["b2"], p_lv["b2"], N2),
        s2=cat_pad(p_mu["s2"], p_lv["s2"], N2),
        t2=cat_pad(p_mu["t2"], p_lv["t2"], N2),
        w3=block_diag_pad(p_mu["w3"], p_lv["w3"], N2, N3),
        b3=cat_pad(p_mu["b3"], p_lv["b3"], N3),
    )


def encoder_forward(x, fused, *, latent, tile_b=None):
    """Run the fused encoder. Returns (mu, logvar), each [B, latent].

    tile_b=None keeps the whole batch in a single grid step (right call at
    small B). For large batches pass tile_b (e.g. 128 on v5e, 256 on v6e) to
    tile the batch axis; the axis is marked "parallel" for megacore sharding.
    """
    B, D0 = x.shape
    if tile_b is None:
        tile_b = B
    assert B % tile_b == 0
    n_out = fused["b3"].shape[1]

    weight_args = (fused["w1"], fused["b1"], fused["s1"], fused["t1"],
                   fused["w2"], fused["b2"], fused["s2"], fused["t2"],
                   fused["w3"], fused["b3"])

    grid_spec = pltpu.PrefetchScalarGridSpec(
        num_scalar_prefetch=0,
        grid=(B // tile_b,),
        in_specs=[pl.BlockSpec((tile_b, D0), lambda i: (i, 0))]
                 + [_full_spec(a.shape) for a in weight_args],
        out_specs=pl.BlockSpec((tile_b, n_out), lambda i: (i, 0)),
    )

    out = pl.pallas_call(
        encoder_fused_kernel,
        out_shape=jax.ShapeDtypeStruct((B, n_out), jnp.float32),
        grid_spec=grid_spec,
        compiler_params=pltpu.CompilerParams(
            dimension_semantics=("parallel",)),
    )(x, *weight_args)

    mu = out[:, :latent]
    logvar = out[:, latent:2 * latent]
    return mu, logvar


# ------------------------------------------------------- parameter builder ---
def make_branch_params(key, dims, latent, eps=1e-5):
    """Deterministic init mirroring PyTorch shapes.

    dims = [D0, D1, D2]; final layer maps D2 -> latent.
    Linear weights ~ U(-1/sqrt(fan_in), +1/sqrt(fan_in)) (PyTorch-style).
    BatchNorm: gamma=1, beta=0, running_mean=0, running_var=1 (init values),
    folded into scale s = gamma/sqrt(var+eps), shift t = beta - mean*s.
    """
    def linear(k, d_in, d_out):
        kw, kb = jax.random.split(k)
        bound = 1.0 / np.sqrt(d_in)
        w = jax.random.uniform(kw, (d_in, d_out), jnp.float32, -bound, bound)
        b = jax.random.uniform(kb, (1, d_out), jnp.float32, -bound, bound)
        return w, b

    k1, k2, k3 = jax.random.split(key, 3)
    w1, b1 = linear(k1, dims[0], dims[1])
    w2, b2 = linear(k2, dims[1], dims[2])
    w3, b3 = linear(k3, dims[2], latent)

    def bn_fold(d):
        gamma = jnp.ones((1, d), jnp.float32)
        beta = jnp.zeros((1, d), jnp.float32)
        rmean = jnp.zeros((1, d), jnp.float32)
        rvar = jnp.ones((1, d), jnp.float32)
        s = gamma / jnp.sqrt(rvar + eps)
        t = beta - rmean * s
        return s, t

    s1, t1 = bn_fold(dims[1])
    s2, t2 = bn_fold(dims[2])
    return dict(w1=w1, b1=b1, s1=s1, t1=t1,
                w2=w2, b2=b2, s2=s2, t2=t2,
                w3=w3, b3=b3)


# --------------------------------------------------------------- reference ---
def branch_reference(x, p):
    h = jnp.maximum(x @ p["w1"] + p["b1"], 0.0) * p["s1"] + p["t1"]
    h = jnp.maximum(h @ p["w2"] + p["b2"], 0.0) * p["s2"] + p["t2"]
    return h @ p["w3"] + p["b3"]


# -------------------------------------------------------------------- main ---
if __name__ == "__main__":
    input_size = 32
    latent_dims = 8
    depth = 3
    batch = 16

    step = (input_size - latent_dims) // depth
    dims = [input_size - step * i for i in range(depth)]   # [32, 24, 16]

    key = jax.random.PRNGKey(0)
    kx, kp = jax.random.split(key)
    x = jax.random.normal(kx, (batch, input_size), jnp.float32)

    # fc_mu = deepcopy(layers); fc_logvar = layers  ->  identical initial
    # weights in both branches (mirrored here; they remain independent params).
    params_mu = make_branch_params(kp, dims, latent_dims)
    params_logvar = jax.tree_util.tree_map(lambda a: a, params_mu)

    fused = fuse_branch_params(params_mu, params_logvar, latent_dims)

    fwd = jax.jit(encoder_forward, static_argnames=("latent", "tile_b"))
    mu, logvar = fwd(x, fused, latent=latent_dims)
    jax.block_until_ready((mu, logvar))

    # Correctness check against a pure-JAX reference of the unfused branches.
    mu_ref = branch_reference(x, params_mu)
    lv_ref = branch_reference(x, params_logvar)
    np.testing.assert_allclose(np.asarray(mu), np.asarray(mu_ref),
                               rtol=1e-5, atol=1e-5)
    np.testing.assert_allclose(np.asarray(logvar), np.asarray(lv_ref),
                               rtol=1e-5, atol=1e-5)
    assert mu.shape == (batch, latent_dims) and logvar.shape == (batch, latent_dims)

    print("KERNEL_OK")
</pallas_src>

<mosaic_0001>
module attributes {stable_mosaic.version = 11 : i64} {
  func.func @encoder_fused_kernel(%arg0: i32, %arg1: memref<16x32xf32, #tpu.memory_space<vmem>>, %arg2: memref<32x128xf32, #tpu.memory_space<vmem>>, %arg3: memref<1x128xf32, #tpu.memory_space<vmem>>, %arg4: memref<1x128xf32, #tpu.memory_space<vmem>>, %arg5: memref<1x128xf32, #tpu.memory_space<vmem>>, %arg6: memref<128x128xf32, #tpu.memory_space<vmem>>, %arg7: memref<1x128xf32, #tpu.memory_space<vmem>>, %arg8: memref<1x128xf32, #tpu.memory_space<vmem>>, %arg9: memref<1x128xf32, #tpu.memory_space<vmem>>, %arg10: memref<128x128xf32, #tpu.memory_space<vmem>>, %arg11: memref<1x128xf32, #tpu.memory_space<vmem>>, %arg12: memref<16x128xf32, #tpu.memory_space<vmem>>) attributes {dimension_semantics = [#tpu.dimension_semantics<parallel>], iteration_bounds = array<i64: 1>, scalar_prefetch = 0 : i64, scratch_operands = 0 : i64, tpu.core_type = #tpu.core_type<tc>, window_params = [{transform_indices = @transform_0, window_bounds = array<i64: 16, 32>}, {pipeline_mode = #tpu.pipeline_mode<synchronous>, transform_indices = @transform_1, window_bounds = array<i64: 32, 128>}, {pipeline_mode = #tpu.pipeline_mode<synchronous>, transform_indices = @transform_2, window_bounds = array<i64: 1, 128>}, {pipeline_mode = #tpu.pipeline_mode<synchronous>, transform_indices = @transform_3, window_bounds = array<i64: 1, 128>}, {pipeline_mode = #tpu.pipeline_mode<synchronous>, transform_indices = @transform_4, window_bounds = array<i64: 1, 128>}, {pipeline_mode = #tpu.pipeline_mode<synchronous>, transform_indices = @transform_5, window_bounds = array<i64: 128, 128>}, {pipeline_mode = #tpu.pipeline_mode<synchronous>, transform_indices = @transform_6, window_bounds = array<i64: 1, 128>}, {pipeline_mode = #tpu.pipeline_mode<synchronous>, transform_indices = @transform_7, window_bounds = array<i64: 1, 128>}, {pipeline_mode = #tpu.pipeline_mode<synchronous>, transform_indices = @transform_8, window_bounds = array<i64: 1, 128>}, {pipeline_mode = #tpu.pipeline_mode<synchronous>, transform_indices = @transform_9, window_bounds = array<i64: 128, 128>}, {pipeline_mode = #tpu.pipeline_mode<synchronous>, transform_indices = @transform_10, window_bounds = array<i64: 1, 128>}, {transform_indices = @transform_11, window_bounds = array<i64: 16, 128>}]} {
    %c0 = arith.constant 0 : index
    %c0_0 = arith.constant 0 : index
    %0 = vector.load %arg1[%c0, %c0_0] : memref<16x32xf32, #tpu.memory_space<vmem>>, vector<16x32xf32>
    %c0_1 = arith.constant 0 : index
    %c0_2 = arith.constant 0 : index
    %1 = vector.load %arg2[%c0_1, %c0_2] : memref<32x128xf32, #tpu.memory_space<vmem>>, vector<32x128xf32>
    %cst = arith.constant dense<0.000000e+00> : vector<16x128xf32>
    %2 = tpu.matmul %0, %1, %cst {dimension_numbers = #tpu.dot_dimension_numbers<[1], [0], [0], [1], [0, 0, 1, 1], [], []>} : vector<16x32xf32>, vector<32x128xf32>, vector<16x128xf32> -> vector<16x128xf32>
    %c0_3 = arith.constant 0 : index
    %c0_4 = arith.constant 0 : index
    %3 = vector.load %arg3[%c0_3, %c0_4] : memref<1x128xf32, #tpu.memory_space<vmem>>, vector<1x128xf32>
    %4 = vector.broadcast %3 : vector<1x128xf32> to vector<16x128xf32>
    %5 = arith.addf %2, %4 : vector<16x128xf32>
    %cst_5 = arith.constant 0.000000e+00 : f32
    %6 = vector.broadcast %cst_5 : f32 to vector<16x128xf32>
    %7 = arith.maximumf %5, %6 : vector<16x128xf32>
    %c0_6 = arith.constant 0 : index
    %c0_7 = arith.constant 0 : index
    %8 = vector.load %arg4[%c0_6, %c0_7] : memref<1x128xf32, #tpu.memory_space<vmem>>, vector<1x128xf32>
    %9 = vector.broadcast %8 : vector<1x128xf32> to vector<16x128xf32>
    %10 = arith.mulf %7, %9 : vector<16x128xf32>
    %c0_8 = arith.constant 0 : index
    %c0_9 = arith.constant 0 : index
    %11 = vector.load %arg5[%c0_8, %c0_9] : memref<1x128xf32, #tpu.memory_space<vmem>>, vector<1x128xf32>
    %12 = vector.broadcast %11 : vector<1x128xf32> to vector<16x128xf32>
    %13 = arith.addf %10, %12 : vector<16x128xf32>
    %c0_10 = arith.constant 0 : index
    %c0_11 = arith.constant 0 : index
    %14 = vector.load %arg6[%c0_10, %c0_11] : memref<128x128xf32, #tpu.memory_space<vmem>>, vector<128x128xf32>
    %cst_12 = arith.constant dense<0.000000e+00> : vector<16x128xf32>
    %15 = tpu.matmul %13, %14, %cst_12 {dimension_numbers = #tpu.dot_dimension_numbers<[1], [0], [0], [1], [0, 0, 1, 1], [], []>} : vector<16x128xf32>, vector<128x128xf32>, vector<16x128xf32> -> vector<16x128xf32>
    %c0_13 = arith.constant 0 : index
    %c0_14 = arith.constant 0 : index
    %16 = vector.load %arg7[%c0_13, %c0_14] : memref<1x128xf32, #tpu.memory_space<vmem>>, vector<1x128xf32>
    %17 = vector.broadcast %16 : vector<1x128xf32> to vector<16x128xf32>
    %18 = arith.addf %15, %17 : vector<16x128xf32>
    %cst_15 = arith.constant 0.000000e+00 : f32
    %19 = vector.broadcast %cst_15 : f32 to vector<16x128xf32>
    %20 = arith.maximumf %18, %19 : vector<16x128xf32>
    %c0_16 = arith.constant 0 : index
    %c0_17 = arith.constant 0 : index
    %21 = vector.load %arg8[%c0_16, %c0_17] : memref<1x128xf32, #tpu.memory_space<vmem>>, vector<1x128xf32>
    %22 = vector.broadcast %21 : vector<1x128xf32> to vector<16x128xf32>
    %23 = arith.mulf %20, %22 : vector<16x128xf32>
    %c0_18 = arith.constant 0 : index
    %c0_19 = arith.constant 0 : index
    %24 = vector.load %arg9[%c0_18, %c0_19] : memref<1x128xf32, #tpu.memory_space<vmem>>, vector<1x128xf32>
    %25 = vector.broadcast %24 : vector<1x128xf32> to vector<16x128xf32>
    %26 = arith.addf %23, %25 : vector<16x128xf32>
    %c0_20 = arith.constant 0 : index
    %c0_21 = arith.constant 0 : index
    %27 = vector.load %arg10[%c0_20, %c0_21] : memref<128x128xf32, #tpu.memory_space<vmem>>, vector<128x128xf32>
    %cst_22 = arith.constant dense<0.000000e+00> : vector<16x128xf32>
    %28 = tpu.matmul %26, %27, %cst_22 {dimension_numbers = #tpu.dot_dimension_numbers<[1], [0], [0], [1], [0, 0, 1, 1], [], []>} : vector<16x128xf32>, vector<128x128xf32>, vector<16x128xf32> -> vector<16x128xf32>
    %c0_23 = arith.constant 0 : index
    %c0_24 = arith.constant 0 : index
    %29 = vector.load %arg11[%c0_23, %c0_24] : memref<1x128xf32, #tpu.memory_space<vmem>>, vector<1x128xf32>
    %30 = vector.broadcast %29 : vector<1x128xf32> to vector<16x128xf32>
    %31 = arith.addf %28, %30 : vector<16x128xf32>
    %c0_25 = arith.constant 0 : index
    %c0_26 = arith.constant 0 : index
    %32 = vector.load %arg12[%c0_25, %c0_26] : memref<16x128xf32, #tpu.memory_space<vmem>>, vector<16x128xf32>
    tpu.vector_store %arg12[%c0_25, %c0_26], %31 {strides = array<i32>} : memref<16x128xf32, #tpu.memory_space<vmem>>, vector<16x128xf32>,
    return
  }
  func.func @transform_0(%arg0: i32) -> (i32, i32) {
    %c0_i32 = arith.constant 0 : i32
    %c0_i32_0 = arith.constant 0 : i32
    return %arg0, %c0_i32 : i32, i32
  }
  func.func @transform_1(%arg0: i32) -> (i32, i32) {
    %c0_i32 = arith.constant 0 : i32
    %c0_i32_0 = arith.constant 0 : i32
    %c0_i32_1 = arith.constant 0 : i32
    return %c0_i32, %c0_i32_0 : i32, i32
  }
  func.func @transform_2(%arg0: i32) -> (i32, i32) {
    %c0_i32 = arith.constant 0 : i32
    %c0_i32_0 = arith.constant 0 : i32
    %c0_i32_1 = arith.constant 0 : i32
    return %c0_i32, %c0_i32_0 : i32, i32
  }
  func.func @transform_3(%arg0: i32) -> (i32, i32) {
    %c0_i32 = arith.constant 0 : i32
    %c0_i32_0 = arith.constant 0 : i32
    %c0_i32_1 = arith.constant 0 : i32
    return %c0_i32, %c0_i32_0 : i32, i32
  }
  func.func @transform_4(%arg0: i32) -> (i32, i32) {
    %c0_i32 = arith.constant 0 : i32
    %c0_i32_0 = arith.constant 0 : i32
    %c0_i32_1 = arith.constant 0 : i32
    return %c0_i32, %c0_i32_0 : i32, i32
  }
  func.func @transform_5(%arg0: i32) -> (i32, i32) {
    %c0_i32 = arith.constant 0 : i32
    %c0_i32_0 = arith.constant 0 : i32
    %c0_i32_1 = arith.constant 0 : i32
    return %c0_i32, %c0_i32_0 : i32, i32
  }
  func.func @transform_6(%arg0: i32) -> (i32, i32) {
    %c0_i32 = arith.constant 0 : i32
    %c0_i32_0 = arith.constant 0 : i32
    %c0_i32_1 = arith.constant 0 : i32
    return %c0_i32, %c0_i32_0 : i32, i32
  }
  func.func @transform_7(%arg0: i32) -> (i32, i32) {
    %c0_i32 = arith.constant 0 : i32
    %c0_i32_0 = arith.constant 0 : i32
    %c0_i32_1 = arith.constant 0 : i32
    return %c0_i32, %c0_i32_0 : i32, i32
  }
  func.func @transform_8(%arg0: i32) -> (i32, i32) {
    %c0_i32 = arith.constant 0 : i32
    %c0_i32_0 = arith.constant 0 : i32
    %c0_i32_1 = arith.constant 0 : i32
    return %c0_i32, %c0_i32_0 : i32, i32
  }
  func.func @transform_9(%arg0: i32) -> (i32, i32) {
    %c0_i32 = arith.constant 0 : i32
    %c0_i32_0 = arith.constant 0 : i32
    %c0_i32_1 = arith.constant 0 : i32
    return %c0_i32, %c0_i32_0 : i32, i32
  }
  func.func @transform_10(%arg0: i32) -> (i32, i32) {
    %c0_i32 = arith.constant 0 : i32
    %c0_i32_0 = arith.constant 0 : i32
    %c0_i32_1 = arith.constant 0 : i32
    return %c0_i32, %c0_i32_0 : i32, i32
  }
  func.func @transform_11(%arg0: i32) -> (i32, i32) {
    %c0_i32 = arith.constant 0 : i32
    %c0_i32_0 = arith.constant 0 : i32
    return %arg0, %c0_i32 : i32, i32
  }
}

</mosaic_0001>

<bundles_post_ra>
// kernel: encoder_forward.1
= control target key start
LH: loop header
LB: loop body
LE: loop exit
PB: predicated region body
PF: predicated region fallthrough
CT: control target
= control target key end

     0   :  { %16 = vsyncpa [#allocation3], 0  ;;  %s906_s0 = inlined_call_operand.hbm [shape: f32[16,32], index: 0, kind: input, shape index: {}]   ;;  %s907_s1 = inlined_call_operand.hbm [shape: f32[32,128], index: 1, kind: input, shape index: {}]   ;;  %s908_s2 = inlined_call_operand.vmem [shape: f32[1,128], index: 2, kind: input, shape index: {}]   ;;  %s909_s3 = inlined_call_operand.vmem [shape: f32[1,128], index: 3, kind: input, shape index: {}]   ;;  %s910_s4 = inlined_call_operand.vmem [shape: f32[1,128], index: 4, kind: input, shape index: {}]   ;;  %s911_s5 = inlined_call_operand.hbm [shape: f32[128,128], index: 5, kind: input, shape index: {}]   ;;  %s912_s6 = inlined_call_operand.vmem [shape: f32[1,128], index: 6, kind: input, shape index: {}]   ;;  %s913_s7 = inlined_call_operand.vmem [shape: f32[1,128], index: 7, kind: input, shape index: {}]   ;;  %s914_s8 = inlined_call_operand.vmem [shape: f32[1,128], index: 8, kind: input, shape index: {}]   ;;  %s915_s9 = inlined_call_operand.hbm [shape: f32[128,128], index: 9, kind: input, shape index: {}]   ;;  %s916_s10 = inlined_call_operand.vmem [shape: f32[1,128], index: 10, kind: input, shape index: {}]   ;;  %s917_s11 = inlined_call_operand.vmem [shape: f32[16,128], index: 11, kind: output, shape index: {}]  }
   0x1   :  { %17 = vsyncpa [#allocation5], 0 }
   0x2   :  { %18 = vsyncpa [#allocation8], 0  ;;  %s737_s17 = smov [#allocation4]   ;;  %s738_s19 = smov [#allocation2]  }
   0x3   :  { %s36_s18 = sshll.u32 %s737_s17, 4  ;;  %s24_s20 = sshll.u32 %s738_s19, 4  ;;  %s37_s18 = int_to_ptr.vmem [resolvable:$true] %s36_s18  ;;  %s803_s20 = int_to_ptr.vmem [resolvable:$true] %s24_s20 }
   0x4   :  { %s643_s23 = scalar_lea.hbm %s907_s1, 512 }
   0x5   :  { %p644_p0 = scmp.ne.s32.totalorder %s907_s1, %s643_s23  ;;  %p647_p1 = scmp.lt.u32.totalorder %s643_s23, %s907_s1 }
   0x7   :  { %p649_p2 = pnand %p647_p1, %p644_p0 }
   0x9   :  { %652 = shalt.err (!%p649_p2)
}
   0xa   :  { %s653_s28 = scalar_lea.vmem %s37_s18, 512  ;;  %p658_p4 = scmp.lt.s32.totalorder %s37_s18, %s37_s18 }
   0xb   :  { %p654_p3 = scmp.ne.s32.totalorder %s37_s18, %s653_s28  ;;  %p659_p5 = scmp.lt.s32.totalorder %s653_s28, %s653_s28 }
   0xd   :  { %p660_p6 = por %p659_p5, %p658_p4 }
   0xf   :  { %p661_p7 = pnand %p660_p6, %p654_p3 }
  0x11   :  { %664 = shalt.err (!%p661_p7)
}
  0x12   :  { %s739_s29 = smov 128   ;;  %s740_s30 = smov 8  }
  0x13   :  { %42 = dma.hbm_to_vmem [thread:$0]  %s907_s1, 512, %s37_s18, [#allocation5], %s739_s29, %s739_s29, %s740_s30  }
  0x14   :  { %s665_s16 = scalar_lea.hbm %s906_s0, 256 }
  0x15   :  { %p666_p8 = scmp.ne.s32.totalorder %s906_s0, %s665_s16  ;;  %p669_p9 = scmp.lt.u32.totalorder %s665_s16, %s906_s0 }
  0x17   :  { %p671_p10 = pnand %p669_p9, %p666_p8 }
  0x19   :  { %674 = shalt.err (!%p671_p10)
}
  0x1a   :  { %s675_s23 = scalar_lea.vmem %s803_s20, 256  ;;  %p680_p12 = scmp.lt.s32.totalorder %s803_s20, %s803_s20 }
  0x1b   :  { %p676_p11 = scmp.ne.s32.totalorder %s803_s20, %s675_s23  ;;  %p681_p13 = scmp.lt.s32.totalorder %s675_s23, %s675_s23 }
  0x1d   :  { %p682_p0 = por %p681_p13, %p680_p12 }
  0x1f   :  { %p683_p1 = pnand %p682_p0, %p676_p11 }
  0x21   :  { %686 = shalt.err (!%p683_p1)
}
  0x22   :  { %30 = dma.hbm_to_vmem [thread:$0]  %s906_s0, 256, %s803_s20, [#allocation3], %s739_s29, %s739_s29, %s740_s30  }
  0x23   :  { %s741_s24 = smov [#allocation6]   ;;  %s742_s26 = smov [#allocation7]  }
  0x24   :  { %s54_s25 = sshll.u32 %s741_s24, 4  ;;  %s72_s27 = sshll.u32 %s742_s26, 4  ;;  %s55_s25 = int_to_ptr.vmem [resolvable:$true] %s54_s25  ;;  %s840_s27 = int_to_ptr.vmem [resolvable:$true] %s72_s27 }
  0x25   :  { %s687_s13 = scalar_lea.hbm %s911_s5, 2048 }
  0x26   :  { %p688_p2 = scmp.ne.s32.totalorder %s911_s5, %s687_s13  ;;  %p691_p3 = scmp.lt.u32.totalorder %s687_s13, %s911_s5 }
  0x28   :  { %p693_p4 = pnand %p691_p3, %p688_p2 }
  0x2a   :  { %696 = shalt.err (!%p693_p4)
}
  0x2b   :  { %s697_s0 = scalar_lea.vmem %s55_s25, 2048  ;;  %p702_p6 = scmp.lt.s32.totalorder %s55_s25, %s55_s25 }
  0x2c   :  { %p698_p5 = scmp.ne.s32.totalorder %s55_s25, %s697_s0  ;;  %p703_p7 = scmp.lt.s32.totalorder %s697_s0, %s697_s0 }
  0x2e   :  { %p704_p8 = por %p703_p7, %p702_p6 }
  0x30   :  { %p705_p9 = pnand %p704_p8, %p698_p5 }
  0x32   :  { %708 = shalt.err (!%p705_p9)
}
  0x33   :  { %60 = dma.hbm_to_vmem [thread:$0]  %s911_s5, 2048, %s55_s25, [#allocation5], %s739_s29, %s739_s29, %s740_s30  }
  0x34   :  { %s709_s23 = scalar_lea.hbm %s915_s9, 2048 }
  0x35   :  { %p710_p10 = scmp.ne.s32.totalorder %s915_s9, %s709_s23  ;;  %p713_p11 = scmp.lt.u32.totalorder %s709_s23, %s915_s9 }
  0x37   :  { %p715_p12 = pnand %p713_p11, %p710_p10 }
  0x39   :  { %718 = shalt.err (!%p715_p12)
}
  0x3a   :  { %s719_s28 = scalar_lea.vmem %s840_s27, 2048  ;;  %p724_p0 = scmp.lt.s32.totalorder %s840_s27, %s840_s27 }
  0x3b   :  { %p720_p13 = scmp.ne.s32.totalorder %s840_s27, %s719_s28  ;;  %p725_p1 = scmp.lt.s32.totalorder %s719_s28, %s719_s28 }
  0x3d   :  { %p726_p2 = por %p725_p1, %p724_p0 }
  0x3f   :  { %p727_p3 = pnand %p726_p2, %p720_p13 }
  0x41   :  { %730 = shalt.err (!%p727_p3)
}
  0x42   :  { %78 = dma.hbm_to_vmem [thread:$0]  %s915_s9, 2048, %s840_s27, [#allocation8], %s739_s29, %s739_s29, %s740_s30  }
  0x43   :  { %731 = dma.done.wait [#allocation3], 256  }
  0x44   :  { %732 = vsyncadd [#allocation3], 4294967040 }
  0x45   :  { %733 = dma.done.wait [#allocation5], 2560  }
  0x46   :  { %734 = vsyncadd [#allocation5], 4294964736 }
  0x47   :  { %735 = dma.done.wait [#allocation8], 2048  }
  0x48   :  { %736 = vsyncadd [#allocation8], 4294965248  ;;  %vm106_vm0 = vcmask 261120   ;;  %v95_v0 = vld [vmem:[#allocation4] sm:$0xff]  ;;  %v96_v1 = vld [vmem:[#allocation4 + $0x8] sm:$0xff] }
  0x49   :  { %v97_v2 = vld [vmem:[#allocation4 + $0x10] sm:$0xff]  ;;  %v565_v3 = vpack.c.bf16 %v96_v1, %v95_v0  ;;  %v98_v4 = vld [vmem:[#allocation4 + $0x18] sm:$0xff]  ;;  %v208_v7 = vld [vmem:[#allocation6] sm:$0xff] }
  0x4a   :  { %v93_v5 = vld [vmem:[#allocation2] sm:$0xff]  ;;  %v569_v6 = vpack.c.bf16 %v98_v4, %v97_v2  ;;  %v209_v8 = vld [vmem:[#allocation6 + $0x8] sm:$0xff]  ;;  %v211_v11 = vld [vmem:[#allocation6 + $0x18] sm:$0xff] }
  0x4b   :  { %492 = vmatprep.mubr.msk.f32.mxu0 %vm106_vm0, %v93_v5  ;;  %v210_v9 = vld [vmem:[#allocation6 + $0x10] sm:$0xff]  ;;  %566 = vmatprep.subr.bf16.mxu0 %v565_v3  ;;  %v573_v10 = vpack.c.bf16 %v209_v8, %v208_v7  ;;  %v212_v13 = vld [vmem:[#allocation6 + $0x20] sm:$0xff]  ;;  %v213_v14 = vld [vmem:[#allocation6 + $0x28] sm:$0xff] }
  0x4c   :  { %568 = vmatpush3.bf16.msra.mxu0 %v565_v3  ;;  %v577_v12 = vpack.c.bf16 %v211_v11, %v210_v9  ;;  %v581_v15 = vpack.c.bf16 %v213_v14, %v212_v13  ;;  %v94_v16 = vld [vmem:[#allocation2 + $0x8] sm:$0xff]  ;;  %v214_v17 = vld [vmem:[#allocation6 + $0x30] sm:$0xff]  ;;  %v216_v20 = vld [vmem:[#allocation6 + $0x40] sm:$0xff] }
  0x4d   :  { %570 = vmatprep.subr.bf16.mxu0 %v569_v6  ;;  %574 = vmatprep.subr.bf16.mxu1 %v573_v10  ;;  %v215_v18 = vld [vmem:[#allocation6 + $0x38] sm:$0xff]  ;;  %v217_v21 = vld [vmem:[#allocation6 + $0x48] sm:$0xff]  ;;  %v218_v23 = vld [vmem:[#allocation6 + $0x50] sm:$0xff] }
  0x4e   :  { %576 = vmatpush3.bf16.msra.mxu1 %v573_v10  ;;  %v585_v19 = vpack.c.bf16 %v215_v18, %v214_v17  ;;  %v589_v22 = vpack.c.bf16 %v217_v21, %v216_v20  ;;  %v219_v24 = vld [vmem:[#allocation6 + $0x58] sm:$0xff]  ;;  %v220_v26 = vld [vmem:[#allocation6 + $0x60] sm:$0xff]  ;;  %v221_v27 = vld [vmem:[#allocation6 + $0x68] sm:$0xff] }
  0x4f   :  { %578 = vmatprep.subr.bf16.mxu1 %v577_v12  ;;  %v593_v25 = vpack.c.bf16 %v219_v24, %v218_v23  ;;  %v597_v28 = vpack.c.bf16 %v221_v27, %v220_v26  ;;  %v222_v29 = vld [vmem:[#allocation6 + $0x70] sm:$0xff]  ;;  %v223_v30 = vld [vmem:[#allocation6 + $0x78] sm:$0xff]  ;;  %v326_v32 = vld [vmem:[#allocation7] sm:$0xff] }
  0x50   :  { %572 = vmatpush3.bf16.msra.mxu0 %v569_v6  ;;  %v601_v31 = vpack.c.bf16 %v223_v30, %v222_v29  ;;  %v327_v33 = vld [vmem:[#allocation7 + $0x8] sm:$0xff]  ;;  %v328_v34 = vld [vmem:[#allocation7 + $0x10] sm:$0xff]  ;;  %v329_v36 = vld [vmem:[#allocation7 + $0x18] sm:$0xff] }
  0x51   :  { %v605_v35 = vpack.c.bf16 %v327_v33, %v326_v32  ;;  %v609_v37 = vpack.c.bf16 %v329_v36, %v328_v34  ;;  %v330_v38 = vld [vmem:[#allocation7 + $0x20] sm:$0xff]  ;;  %v331_v39 = vld [vmem:[#allocation7 + $0x28] sm:$0xff]  ;;  %v332_v41 = vld [vmem:[#allocation7 + $0x30] sm:$0xff] }
  0x52   :  { %580 = vmatpush3.bf16.msra.mxu1 %v577_v12  ;;  %v613_v40 = vpack.c.bf16 %v331_v39, %v330_v38  ;;  %v333_v42 = vld [vmem:[#allocation7 + $0x38] sm:$0xff]  ;;  %v334_v44 = vld [vmem:[#allocation7 + $0x40] sm:$0xff]  ;;  %v335_v45 = vld [vmem:[#allocation7 + $0x48] sm:$0xff] }
  0x53   :  { %493 = vmatmul.mubr.msk.f32.vlgmr.msra.gmra.mrb[0].mxu0 %vm106_vm0, %v94_v16  ;;  %582 = vmatprep.subr.bf16.mxu1 %v581_v15  ;;  %v617_v43 = vpack.c.bf16 %v333_v42, %v332_v41  ;;  %v621_v46 = vpack.c.bf16 %v335_v45, %v334_v44  ;;  %v336_v47 = vld [vmem:[#allocation7 + $0x50] sm:$0xff]  ;;  %v337_v48 = vld [vmem:[#allocation7 + $0x58] sm:$0xff]  ;;  %v338_v63 = vld [vmem:[#allocation7 + $0x60] sm:$0xff] }
  0x54   :  { %606 = vmatprep.subr.bf16.mxu0 %v605_v35  ;;  %v625_v49 = vpack.c.bf16 %v337_v48, %v336_v47  ;;  %v433_v50 = vld [vmem:[%s908_s2] ss:$0 sm:$0xff]  ;;  %v339_v0 = vld [vmem:[#allocation7 + $0x68] sm:$0xff]  ;;  %v341_v3 = vld [vmem:[#allocation7 + $0x78] sm:$0xff] }
  0x55   :  { %608 = vmatpush3.bf16.msra.mxu0 %v605_v35  ;;  %v436_v54 = vld [vmem:[%s909_s3] ss:$0 sm:$0xff]  ;;  %v629_v1 = vpack.c.bf16 %v339_v0, %v338_v63 }
  0x56   :  { %584 = vmatpush3.bf16.msra.mxu1 %v581_v15  ;;  %610 = vmatprep.subr.bf16.mxu0 %v609_v37  ;;  %v437_v59 = vld [vmem:[%s910_s4] ss:$0 sm:$0xff] }
  0x57   :  { %586 = vmatprep.subr.bf16.mxu1 %v585_v19  ;;  %v340_v2 = vld [vmem:[#allocation7 + $0x70] sm:$0xff] }
  0x58   :  { %v633_v4 = vpack.c.bf16 %v341_v3, %v340_v2  ;;  %v438_v5 = vld [vmem:[%s912_s6] ss:$0 sm:$0xff] }
  0x59   :  { %612 = vmatpush3.bf16.msra.mxu0 %v609_v37  ;;  %v439_v9 = vld [vmem:[%s913_s7] ss:$0 sm:$0xff] }
  0x5a   :  { %588 = vmatpush3.bf16.msra.mxu1 %v585_v19  ;;  %614 = vmatprep.subr.bf16.mxu0 %v613_v40  ;;  %v440_v14 = vld [vmem:[%s914_s8] ss:$0 sm:$0xff] }
  0x5b   :  { %590 = vmatprep.subr.bf16.mxu1 %v589_v22  ;;  %v441_v18 = vld [vmem:[%s916_s10] ss:$0 sm:$0xff] }
  0x5d   :  { %616 = vmatpush3.bf16.msra.mxu0 %v613_v40 }
  0x5e   :  { %592 = vmatpush3.bf16.msra.mxu1 %v589_v22  ;;  %618 = vmatprep.subr.bf16.mxu0 %v617_v43 }
  0x5f   :  { %594 = vmatprep.subr.bf16.mxu1 %v593_v25 }
  0x61   :  { %620 = vmatpush3.bf16.msra.mxu0 %v617_v43 }
  0x62   :  { %596 = vmatpush3.bf16.msra.mxu1 %v593_v25  ;;  %622 = vmatprep.subr.bf16.mxu0 %v621_v46 }
  0x63   :  { %598 = vmatprep.subr.bf16.mxu1 %v597_v28 }
  0x65   :  { %624 = vmatpush3.bf16.msra.mxu0 %v621_v46 }
  0x66   :  { %600 = vmatpush3.bf16.msra.mxu1 %v597_v28  ;;  %626 = vmatprep.subr.bf16.mxu0 %v625_v49 }
  0x67   :  { %602 = vmatprep.subr.bf16.mxu1 %v601_v31 }
  0x69   :  { %628 = vmatpush3.bf16.msra.mxu0 %v625_v49 }
  0x6a   :  { %604 = vmatpush3.bf16.msra.mxu1 %v601_v31  ;;  %630 = vmatprep.subr.bf16.mxu0 %v629_v1 }
  0x6d   :  { %632 = vmatpush3.bf16.msra.mxu0 %v629_v1 }
  0x6e   :  { %634 = vmatprep.subr.bf16.mxu0 %v633_v4 }
  0x71   :  { %636 = vmatpush3.bf16.msra.mxu0 %v633_v4 }
 0x126   :  { %v494_v51 = vpop.f32.mrb[0].mxu0 }
 0x127   :  { %v185_v52 = vadd.f32 %v494_v51, %v433_v50  ;;  %v179_v53 = vpop.f32.mrb[1].mxu0 }
 0x128   :  { %v180_v55 = vadd.f32 %v433_v50, %v179_v53 }
 0x129   :  { %v189_v56 = vmax.f32 %v185_v52, 0.0 }
 0x12a   :  { %v188_v57 = vmax.f32 %v180_v55, 0.0 }
 0x12b   :  { %v198_v58 = vmul.f32 %v436_v54, %v189_v56 }
 0x12c   :  { %v197_v60 = vmul.f32 %v436_v54, %v188_v57 }
 0x12d   :  { %v207_v62 = vadd.f32 %v437_v59, %v198_v58 }
 0x12e   :  { %v206_v61 = vadd.f32 %v437_v59, %v197_v60 }
 0x130   :  { %527 = vmatprep.mubr.f32.mxu1 %v206_v61 }
 0x131   :  { %528 = vmatmul.mubr.f32.vlgmr.msra.gmra.mrb[0].mxu1 %v207_v62 }
 0x204   :  { %v529_v6 = vpop.f32.mrb[0].mxu1 }
 0x205   :  { %v303_v7 = vadd.f32 %v529_v6, %v438_v5  ;;  %v297_v8 = vpop.f32.mrb[1].mxu1 }
 0x206   :  { %v298_v10 = vadd.f32 %v438_v5, %v297_v8 }
 0x207   :  { %v307_v11 = vmax.f32 %v303_v7, 0.0 }
 0x208   :  { %v306_v12 = vmax.f32 %v298_v10, 0.0 }
 0x209   :  { %v316_v13 = vmul.f32 %v439_v9, %v307_v11 }
 0x20a   :  { %v315_v15 = vmul.f32 %v439_v9, %v306_v12 }
 0x20b   :  { %v325_v17 = vadd.f32 %v440_v14, %v316_v13 }
 0x20c   :  { %v324_v16 = vadd.f32 %v440_v14, %v315_v15 }
 0x20e   :  { %562 = vmatprep.mubr.f32.mxu0 %v324_v16 }
 0x20f   :  { %563 = vmatmul.mubr.f32.vlgmr.msra.gmra.mrb[2].mxu0 %v325_v17 }
 0x2e2   :  { %v564_v19 = vpop.f32.mrb[2].mxu0 }
 0x2e3   :  { %v421_v20 = vadd.f32 %v564_v19, %v441_v18  ;;  %v415_v21 = vpop.f32.mrb[3].mxu0 }
 0x2e4   :  { %v416_v22 = vadd.f32 %v441_v18, %v415_v21 }
 0x2e5   :  { %425 = vst [vmem:[%s917_s11 + $0x8] sm:$0xff] %v421_v20 }
 0x2e6   :  { %424 = vst [vmem:[%s917_s11] sm:$0xff] %v416_v22 }
 0x2e7   :  { %430 = vsyncpa [#allocation3], 1 }
 0x2e8   :  { %431 = vsyncpa [#allocation5], 1 }
 0x2e9   :  { %432 = vsyncpa [#allocation8], 1 }

</bundles_post_ra>
